<compile_context>
chip_gen: v5e
topology: v5e:2x2
jax: 0.10.0
libtpu: 0.0.40
codegen_flags: <defaults>
</compile_context>

<pallas_src>
import functools

import jax
import jax.numpy as jnp
from jax import lax
from jax.experimental import pallas as pl
from jax.experimental.pallas import tpu as pltpu

INPUT_DIM = 28 * 28    # 784
HIDDEN_DIM = 100
OUTPUT_DIM = 10

H_PAD = 128            # hidden padded to one full lane register
O_PAD = 128            # output padded to one full lane register


def _round_up(x, m):
    return (x + m - 1) // m * m


# ------------------------------- Pallas kernel -------------------------------

def mlp_kernel(x_ref, w1_ref, w2_ref, w3_ref, w4_ref, b_ref, o_ref, *,
               chunk, num_chunks):
    # Packed biases: rows 0..3 of an (8,128) f32 tile.
    b1 = b_ref[0:1, :]
    b2 = b_ref[1:2, :]
    b3 = b_ref[2:3, :]
    b4 = b_ref[3:4, :]

    def body(j, carry):
        r = pl.multiple_of(j * chunk, chunk)
        # f32 x tile is cast to bf16 in-kernel (free under the MXU), fc dots run
        # with bf16 operands and f32 accumulation; epilogues stay f32 on the VPU.
        x = x_ref[pl.ds(r, chunk), :].astype(jnp.bfloat16)
        h = jnp.dot(x, w1_ref[...], preferred_element_type=jnp.float32)
        h = jnp.maximum(h + b1, 0.0)
        h = jnp.dot(h.astype(jnp.bfloat16), w2_ref[...],
                    preferred_element_type=jnp.float32)
        h = jnp.maximum(h + b2, 0.0)
        h = jnp.dot(h.astype(jnp.bfloat16), w3_ref[...],
                    preferred_element_type=jnp.float32)
        h = jnp.maximum(h + b3, 0.0)
        out = jnp.dot(h.astype(jnp.bfloat16), w4_ref[...],
                      preferred_element_type=jnp.float32)
        # bf16 pack only at store time; padded output lanes stay exactly 0.
        o_ref[pl.ds(r, chunk), :] = (out + b4).astype(o_ref.dtype)
        return carry

    lax.fori_loop(0, num_chunks, body, 0, unroll=True)


# ------------------------------ parameter prep -------------------------------

def prepare_params(params):
    """Transpose PyTorch (out,in) weights to (in,out), zero-pad to lane-dense
    128-wide outputs (and 128-tall inputs where they consume padded hidden),
    cast weights to bf16, and pack the four biases into one (8,128) f32 tile."""
    w1, b1, w2, b2, w3, b3, w4, b4 = params

    def prep_w(w, in_pad, out_pad):
        wt = w.T                                          # (in, out)
        k, n = wt.shape
        wt = jnp.pad(wt, ((0, in_pad - k), (0, out_pad - n)))
        return wt.astype(jnp.bfloat16)

    def pad_b(b):
        return jnp.pad(b.astype(jnp.float32), (0, O_PAD - b.shape[0]))

    b_pack = jnp.zeros((8, O_PAD), jnp.float32)
    b_pack = b_pack.at[0].set(pad_b(b1))
    b_pack = b_pack.at[1].set(pad_b(b2))
    b_pack = b_pack.at[2].set(pad_b(b3))
    b_pack = b_pack.at[3].set(pad_b(b4))

    return (prep_w(w1, INPUT_DIM, H_PAD),
            prep_w(w2, H_PAD, H_PAD),
            prep_w(w3, H_PAD, H_PAD),
            prep_w(w4, H_PAD, O_PAD),
            b_pack)


# ------------------------------- Pallas wrapper -------------------------------

def ann_forward(x, prepped, *, max_tile_m=1024, min_steps=2):
    """x: (B, 784) f32.  Returns (B, 10) f32 logits."""
    w1, w2, w3, w4, b_pack = prepped
    B, K = x.shape
    assert K == INPUT_DIM, K

    # Tile selection: amortize the ~0.35 us/step overhead with big tiles, but keep
    # >= min_steps grid steps when the batch allows it (v7x megacore sharding) and
    # round tm to the actual per-step work to minimize tail padding.
    steps = max(pl.cdiv(B, max_tile_m), min(min_steps, pl.cdiv(B, 16)))
    tm = _round_up(pl.cdiv(B, steps), 16)
    b_pad = _round_up(B, tm)
    if b_pad != B:
        # Only pads the ragged tail (zero rows -> bias-valued rows, sliced off below).
        x = jnp.pad(x, ((0, b_pad - B), (0, 0)))

    # In-kernel sub-chunking (MXU/VPU overlap) when the tile divides cleanly.
    chunk = 256 if (tm > 256 and tm % 256 == 0) else tm
    num_chunks = tm // chunk

    kernel = functools.partial(mlp_kernel, chunk=chunk, num_chunks=num_chunks)
    const = lambda i: (0, 0)          # weights/biases: same block every step -> resident

    out = pl.pallas_call(
        kernel,
        out_shape=jax.ShapeDtypeStruct((b_pad, O_PAD), jnp.bfloat16),
        grid_spec=pltpu.PrefetchScalarGridSpec(
            num_scalar_prefetch=0,
            grid=(b_pad // tm,),
            in_specs=[
                pl.BlockSpec((tm, INPUT_DIM), lambda i: (i, 0)),    # x tile (f32, pipelined)
                pl.BlockSpec((INPUT_DIM, H_PAD), const),            # w1
                pl.BlockSpec((H_PAD, H_PAD), const),                # w2
                pl.BlockSpec((H_PAD, H_PAD), const),                # w3
                pl.BlockSpec((H_PAD, O_PAD), const),                # w4
                pl.BlockSpec((8, O_PAD), const),                    # packed biases
            ],
            out_specs=pl.BlockSpec((tm, O_PAD), lambda i: (i, 0)),  # lane-dense bf16
        ),
        compiler_params=pltpu.CompilerParams(
            dimension_semantics=("parallel",),    # megacore on v7x
            vmem_limit_bytes=48 << 20,            # big f32 x tiles fit v5e's scoped VMEM
        ),
    )(x, w1, w2, w3, w4, b_pack)

    return out[:B, :OUTPUT_DIM].astype(jnp.float32)


# --------------------------------- init / ref ---------------------------------

def init_params(key):
    ks = jax.random.split(key, 8)

    def uinit(k, shape, fan_in):
        bound = 1.0 / jnp.sqrt(fan_in)
        return jax.random.uniform(k, shape, jnp.float32, -bound, bound)

    w1 = uinit(ks[0], (HIDDEN_DIM, INPUT_DIM), INPUT_DIM)
    b1 = uinit(ks[1], (HIDDEN_DIM,), INPUT_DIM)
    w2 = uinit(ks[2], (HIDDEN_DIM, HIDDEN_DIM), HIDDEN_DIM)
    b2 = uinit(ks[3], (HIDDEN_DIM,), HIDDEN_DIM)
    w3 = uinit(ks[4], (HIDDEN_DIM, HIDDEN_DIM), HIDDEN_DIM)
    b3 = uinit(ks[5], (HIDDEN_DIM,), HIDDEN_DIM)
    w4 = uinit(ks[6], (OUTPUT_DIM, HIDDEN_DIM), HIDDEN_DIM)
    b4 = uinit(ks[7], (OUTPUT_DIM,), HIDDEN_DIM)
    return (w1, b1, w2, b2, w3, b3, w4, b4)


def ann_forward_ref(x, params):
    """Pure-JAX f32 reference matching the PyTorch forward."""
    w1, b1, w2, b2, w3, b3, w4, b4 = params
    h = jnp.maximum(x @ w1.T + b1, 0.0)
    h = jnp.maximum(h @ w2.T + b2, 0.0)
    h = jnp.maximum(h @ w3.T + b3, 0.0)
    return h @ w4.T + b4


if __name__ == "__main__":
    key = jax.random.PRNGKey(0)
    k_x, k_p = jax.random.split(key)

    # The module implies flattened 28x28 single-channel images: (batch, 784).
    x = jax.random.normal(k_x, (2, INPUT_DIM), dtype=jnp.float32)
    params = init_params(k_p)
    prepped = prepare_params(params)   # transpose / pad / bf16-cast once at init

    out = jax.block_until_ready(ann_forward(x, prepped))
    ref = jax.block_until_ready(ann_forward_ref(x, params))

    assert out.shape == (2, OUTPUT_DIM), out.shape
    # bf16 MXU operands / bf16 logit store with f32 accumulation -> loosened tolerance.
    assert jnp.allclose(out, ref, atol=5e-2, rtol=5e-2), (
        "mismatch vs reference", float(jnp.max(jnp.abs(out - ref))))
    print("KERNEL_OK")
</pallas_src>

<mosaic_0001>
module attributes {stable_mosaic.version = 11 : i64} {
  func.func @mlp_kernel(%arg0: i32, %arg1: memref<16x784xf32, #tpu.memory_space<vmem>>, %arg2: memref<784x128xbf16, #tpu.memory_space<vmem>>, %arg3: memref<128x128xbf16, #tpu.memory_space<vmem>>, %arg4: memref<128x128xbf16, #tpu.memory_space<vmem>>, %arg5: memref<128x128xbf16, #tpu.memory_space<vmem>>, %arg6: memref<8x128xf32, #tpu.memory_space<vmem>>, %arg7: memref<16x128xbf16, #tpu.memory_space<vmem>>) attributes {dimension_semantics = [#tpu.dimension_semantics<parallel>], iteration_bounds = array<i64: 1>, scalar_prefetch = 0 : i64, scratch_operands = 0 : i64, tpu.core_type = #tpu.core_type<tc>, window_params = [{transform_indices = @transform_0, window_bounds = array<i64: 16, 784>}, {pipeline_mode = #tpu.pipeline_mode<synchronous>, transform_indices = @transform_1, window_bounds = array<i64: 784, 128>}, {pipeline_mode = #tpu.pipeline_mode<synchronous>, transform_indices = @transform_2, window_bounds = array<i64: 128, 128>}, {pipeline_mode = #tpu.pipeline_mode<synchronous>, transform_indices = @transform_3, window_bounds = array<i64: 128, 128>}, {pipeline_mode = #tpu.pipeline_mode<synchronous>, transform_indices = @transform_4, window_bounds = array<i64: 128, 128>}, {pipeline_mode = #tpu.pipeline_mode<synchronous>, transform_indices = @transform_5, window_bounds = array<i64: 8, 128>}, {transform_indices = @transform_6, window_bounds = array<i64: 16, 128>}]} {
    %c0 = arith.constant 0 : index
    %c0_0 = arith.constant 0 : index
    %0 = vector.load %arg6[%c0, %c0_0] : memref<8x128xf32, #tpu.memory_space<vmem>>, vector<1x128xf32>
    %c1 = arith.constant 1 : index
    %c0_1 = arith.constant 0 : index
    %1 = vector.load %arg6[%c1, %c0_1] : memref<8x128xf32, #tpu.memory_space<vmem>>, vector<1x128xf32>
    %c2 = arith.constant 2 : index
    %c0_2 = arith.constant 0 : index
    %2 = vector.load %arg6[%c2, %c0_2] : memref<8x128xf32, #tpu.memory_space<vmem>>, vector<1x128xf32>
    %c3 = arith.constant 3 : index
    %c0_3 = arith.constant 0 : index
    %3 = vector.load %arg6[%c3, %c0_3] : memref<8x128xf32, #tpu.memory_space<vmem>>, vector<1x128xf32>
    %c0_i32 = arith.constant 0 : i32
    %c16_i32 = arith.constant 16 : i32
    %4 = arith.muli %c0_i32, %c16_i32 : i32
    %5 = tpu.assume_multiple %4, 16 : i32
    %6 = arith.index_cast %5 : i32 to index
    %c0_4 = arith.constant 0 : index
    %7 = vector.load %arg1[%6, %c0_4] : memref<16x784xf32, #tpu.memory_space<vmem>>, vector<16x784xf32>
    %8 = arith.truncf %7 : vector<16x784xf32> to vector<16x784xbf16>
    %c0_5 = arith.constant 0 : index
    %c0_6 = arith.constant 0 : index
    %9 = vector.load %arg2[%c0_5, %c0_6] : memref<784x128xbf16, #tpu.memory_space<vmem>>, vector<784x128xbf16>
    %cst = arith.constant dense<0.000000e+00> : vector<16x128xf32>
    %10 = tpu.matmul %8, %9, %cst {dimension_numbers = #tpu.dot_dimension_numbers<[1], [0], [0], [1], [0, 0, 1, 1], [], []>} : vector<16x784xbf16>, vector<784x128xbf16>, vector<16x128xf32> -> vector<16x128xf32>
    %11 = vector.broadcast %0 : vector<1x128xf32> to vector<16x128xf32>
    %12 = arith.addf %10, %11 : vector<16x128xf32>
    %cst_7 = arith.constant 0.000000e+00 : f32
    %13 = vector.broadcast %cst_7 : f32 to vector<16x128xf32>
    %14 = arith.maximumf %12, %13 : vector<16x128xf32>
    %15 = arith.truncf %14 : vector<16x128xf32> to vector<16x128xbf16>
    %c0_8 = arith.constant 0 : index
    %c0_9 = arith.constant 0 : index
    %16 = vector.load %arg3[%c0_8, %c0_9] : memref<128x128xbf16, #tpu.memory_space<vmem>>, vector<128x128xbf16>
    %cst_10 = arith.constant dense<0.000000e+00> : vector<16x128xf32>
    %17 = tpu.matmul %15, %16, %cst_10 {dimension_numbers = #tpu.dot_dimension_numbers<[1], [0], [0], [1], [0, 0, 1, 1], [], []>} : vector<16x128xbf16>, vector<128x128xbf16>, vector<16x128xf32> -> vector<16x128xf32>
    %18 = vector.broadcast %1 : vector<1x128xf32> to vector<16x128xf32>
    %19 = arith.addf %17, %18 : vector<16x128xf32>
    %cst_11 = arith.constant 0.000000e+00 : f32
    %20 = vector.broadcast %cst_11 : f32 to vector<16x128xf32>
    %21 = arith.maximumf %19, %20 : vector<16x128xf32>
    %22 = arith.truncf %21 : vector<16x128xf32> to vector<16x128xbf16>
    %c0_12 = arith.constant 0 : index
    %c0_13 = arith.constant 0 : index
    %23 = vector.load %arg4[%c0_12, %c0_13] : memref<128x128xbf16, #tpu.memory_space<vmem>>, vector<128x128xbf16>
    %cst_14 = arith.constant dense<0.000000e+00> : vector<16x128xf32>
    %24 = tpu.matmul %22, %23, %cst_14 {dimension_numbers = #tpu.dot_dimension_numbers<[1], [0], [0], [1], [0, 0, 1, 1], [], []>} : vector<16x128xbf16>, vector<128x128xbf16>, vector<16x128xf32> -> vector<16x128xf32>
    %25 = vector.broadcast %2 : vector<1x128xf32> to vector<16x128xf32>
    %26 = arith.addf %24, %25 : vector<16x128xf32>
    %cst_15 = arith.constant 0.000000e+00 : f32
    %27 = vector.broadcast %cst_15 : f32 to vector<16x128xf32>
    %28 = arith.maximumf %26, %27 : vector<16x128xf32>
    %29 = arith.truncf %28 : vector<16x128xf32> to vector<16x128xbf16>
    %c0_16 = arith.constant 0 : index
    %c0_17 = arith.constant 0 : index
    %30 = vector.load %arg5[%c0_16, %c0_17] : memref<128x128xbf16, #tpu.memory_space<vmem>>, vector<128x128xbf16>
    %cst_18 = arith.constant dense<0.000000e+00> : vector<16x128xf32>
    %31 = tpu.matmul %29, %30, %cst_18 {dimension_numbers = #tpu.dot_dimension_numbers<[1], [0], [0], [1], [0, 0, 1, 1], [], []>} : vector<16x128xbf16>, vector<128x128xbf16>, vector<16x128xf32> -> vector<16x128xf32>
    %32 = vector.broadcast %3 : vector<1x128xf32> to vector<16x128xf32>
    %33 = arith.addf %31, %32 : vector<16x128xf32>
    %34 = arith.truncf %33 : vector<16x128xf32> to vector<16x128xbf16>
    %35 = arith.index_cast %5 : i32 to index
    %c0_19 = arith.constant 0 : index
    %36 = vector.load %arg7[%35, %c0_19] : memref<16x128xbf16, #tpu.memory_space<vmem>>, vector<16x128xbf16>
    tpu.vector_store %arg7[%35, %c0_19], %34 {strides = array<i32>} : memref<16x128xbf16, #tpu.memory_space<vmem>>, vector<16x128xbf16>,
    %c1_i32 = arith.constant 1 : i32
    return
  }
  func.func @transform_0(%arg0: i32) -> (i32, i32) {
    %c0_i32 = arith.constant 0 : i32
    %c0_i32_0 = arith.constant 0 : i32
    return %arg0, %c0_i32 : i32, i32
  }
  func.func @transform_1(%arg0: i32) -> (i32, i32) {
    %c0_i32 = arith.constant 0 : i32
    %c0_i32_0 = arith.constant 0 : i32
    %c0_i32_1 = arith.constant 0 : i32
    return %c0_i32, %c0_i32_0 : i32, i32
  }
  func.func @transform_2(%arg0: i32) -> (i32, i32) {
    %c0_i32 = arith.constant 0 : i32
    %c0_i32_0 = arith.constant 0 : i32
    %c0_i32_1 = arith.constant 0 : i32
    return %c0_i32, %c0_i32_0 : i32, i32
  }
  func.func @transform_3(%arg0: i32) -> (i32, i32) {
    %c0_i32 = arith.constant 0 : i32
    %c0_i32_0 = arith.constant 0 : i32
    %c0_i32_1 = arith.constant 0 : i32
    return %c0_i32, %c0_i32_0 : i32, i32
  }
  func.func @transform_4(%arg0: i32) -> (i32, i32) {
    %c0_i32 = arith.constant 0 : i32
    %c0_i32_0 = arith.constant 0 : i32
    %c0_i32_1 = arith.constant 0 : i32
    return %c0_i32, %c0_i32_0 : i32, i32
  }
  func.func @transform_5(%arg0: i32) -> (i32, i32) {
    %c0_i32 = arith.constant 0 : i32
    %c0_i32_0 = arith.constant 0 : i32
    %c0_i32_1 = arith.constant 0 : i32
    return %c0_i32, %c0_i32_0 : i32, i32
  }
  func.func @transform_6(%arg0: i32) -> (i32, i32) {
    %c0_i32 = arith.constant 0 : i32
    %c0_i32_0 = arith.constant 0 : i32
    return %arg0, %c0_i32 : i32, i32
  }
}

</mosaic_0001>

<bundles_post_ra>
// kernel: tpu_custom_call.1
= control target key start
LH: loop header
LB: loop body
LE: loop exit
PB: predicated region body
PF: predicated region fallthrough
CT: control target
= control target key end

     0   :  { %11 = vsyncpa [#allocation3], 0  ;;  %s1558_s0 = inlined_call_operand.hbm [shape: f32[16,784], index: 0, kind: input, shape index: {}]   ;;  %s1559_s1 = inlined_call_operand.hbm [shape: bf16[784,128], index: 1, kind: input, shape index: {}]   ;;  %s1560_s2 = inlined_call_operand.hbm [shape: bf16[128,128], index: 2, kind: input, shape index: {}]   ;;  %s1561_s3 = inlined_call_operand.hbm [shape: bf16[128,128], index: 3, kind: input, shape index: {}]   ;;  %s1562_s4 = inlined_call_operand.hbm [shape: bf16[128,128], index: 4, kind: input, shape index: {}]   ;;  %s1563_s5 = inlined_call_operand.hbm [shape: f32[8,128], index: 5, kind: input, shape index: {}]   ;;  %s1564_s6 = inlined_call_operand.hbm [shape: bf16[16,128], index: 6, kind: output, shape index: {}]  }
   0x1   :  { %12 = vsyncpa [#allocation6], 0 }
   0x2   :  { %13 = vsyncpa [#allocation9], 0 }
   0x3   :  { %14 = vsyncpa [#allocation12], 0  ;;  %s33_s23 = sshll.u32 %s1559_s1, 4  ;;  %s34_s23 = int_to_ptr.hbm [resolvable:$true] %s33_s23 }
   0x4   :  { %15 = vsyncpa [#allocation4], 0  ;;  %s1476_s24 = smov [#allocation5]   ;;  %s59_s28 = sshll.u32 %s1561_s3, 4  ;;  %s60_s28 = int_to_ptr.hbm [resolvable:$true] %s59_s28 }
   0x5   :  { %s35_s25 = sshll.u32 %s1476_s24, 4  ;;  %s1477_s29 = smov 64   ;;  %s36_s25 = int_to_ptr.vmem [resolvable:$true] %s35_s25 }
   0x6   :  { %s1478_s30 = smov 4   ;;  %s1479_s7 = smov [#allocation8]  }
   0x7   :  { %41 = dma.hbm_to_vmem [thread:$0]  %s34_s23, 6272, %s36_s25, [#allocation6], %s1477_s29, %s1477_s29, %s1478_s30  }
   0x8   :  { %s61_s8 = sshll.u32 %s1479_s7, 4  ;;  %s20_s10 = sshll.u32 %s1558_s0, 4  ;;  %s62_s8 = int_to_ptr.vmem [resolvable:$true] %s61_s8  ;;  %s21_s10 = int_to_ptr.hbm [resolvable:$true] %s20_s10 }
   0x9   :  { %67 = dma.hbm_to_vmem [thread:$0]  %s60_s28, 1024, %s62_s8, [#allocation9], %s1477_s29, %s1477_s29, %s1478_s30  }
   0xa   :  { %s1480_s3 = smov [#allocation2]   ;;  %s46_s14 = sshll.u32 %s1560_s2, 4  ;;  %s47_s14 = int_to_ptr.hbm [resolvable:$true] %s46_s14 }
   0xb   :  { %s22_s11 = sshll.u32 %s1480_s3, 4  ;;  %s1481_s15 = smov 896   ;;  %s23_s11 = int_to_ptr.vmem [resolvable:$true] %s22_s11 }
   0xc   :  { %s1482_s16 = smov 56   ;;  %s1483_s17 = smov [#allocation7]  }
   0xd   :  { %28 = dma.hbm_to_vmem [thread:$0]  %s21_s10, 1792, %s23_s11, [#allocation3], %s1481_s15, %s1481_s15, %s1482_s16  }
   0xe   :  { %s48_s18 = sshll.u32 %s1483_s17, 4  ;;  %s72_s20 = sshll.u32 %s1562_s4, 4  ;;  %s49_s18 = int_to_ptr.vmem [resolvable:$true] %s48_s18  ;;  %s73_s20 = int_to_ptr.hbm [resolvable:$true] %s72_s20 }
   0xf   :  { %54 = dma.hbm_to_vmem [thread:$0]  %s47_s14, 1024, %s49_s18, [#allocation6], %s1477_s29, %s1477_s29, %s1478_s30  }
  0x10   :  { %s86_s2 = sshll.u32 %s1563_s5, 4  ;;  %s1484_s23 = smov [#allocation10]   ;;  %s87_s2 = int_to_ptr.hbm [resolvable:$true] %s86_s2 }
  0x11   :  { %s74_s24 = sshll.u32 %s1484_s23, 4  ;;  %s1485_s25 = smov [#allocation11]   ;;  %s75_s24 = int_to_ptr.vmem [resolvable:$true] %s74_s24 }
  0x12   :  { %80 = dma.hbm_to_vmem [thread:$0]  %s73_s20, 1024, %s75_s24, [#allocation9], %s1477_s29, %s1477_s29, %s1478_s30  }
  0x13   :  { %s88_s4 = sshll.u32 %s1485_s25, 4  ;;  %s89_s4 = int_to_ptr.vmem [resolvable:$true] %s88_s4 }
  0x14   :  { %91 = dma.hbm_to_vmem [thread:$0]  %s87_s2, 128, %s89_s4, [#allocation12]  }
  0x15   :  { %1466 = dma.done.wait [#allocation3], 1792  }
  0x16   :  { %1467 = vsyncadd [#allocation3], 4294965504 }
  0x17   :  { %1468 = dma.done.wait [#allocation6], 7296  }
  0x18   :  { %1469 = vsyncadd [#allocation6], 4294960000 }
  0x19   :  { %1470 = dma.done.wait [#allocation9], 2048  }
  0x1a   :  { %1471 = vsyncadd [#allocation9], 4294965248 }
  0x1b   :  { %1472 = dma.done.wait [#allocation12], 128  }
  0x1c   :  { %1473 = vsyncadd [#allocation12], 4294967168  ;;  %v1212_v0 = vld [vmem:[#allocation5 + $0x38] sm:$0xff]  ;;  %v1211_v4 = vld [vmem:[#allocation5 + $0x30] sm:$0xff]  ;;  %vm538_vm0 = vcmask 130048   ;;  %s1486_s5 = smov [#allocation13]  }
  0x1d   :  { %v1220_v1 = vld [vmem:[#allocation5 + $0x78] sm:$0xff]  ;;  %542 = vmatpush.bf16.msra.mxu0 %v1212_v0  ;;  %v1219_v5 = vld [vmem:[#allocation5 + $0x70] sm:$0xff]  ;;  %v1210_v8 = vld [vmem:[#allocation5 + $0x28] sm:$0xff]  ;;  %s894_s26 = sshll.u32 %s1486_s5, 4  ;;  %s896_s7 = sshll.u32 %s1564_s6, 4  ;;  %s895_s26 = int_to_ptr.vmem [resolvable:$true] %s894_s26  ;;  %s897_s7 = int_to_ptr.hbm [resolvable:$true] %s896_s7 }
  0x1e   :  { %v1228_v2 = vld [vmem:[#allocation5 + $0xb8] sm:$0xff]  ;;  %556 = vmatpush.bf16.msra.mxu1 %v1220_v1  ;;  %v1227_v6 = vld [vmem:[#allocation5 + $0xb0] sm:$0xff]  ;;  %v1218_v9 = vld [vmem:[#allocation5 + $0x68] sm:$0xff] }
  0x1f   :  { %v1236_v3 = vld [vmem:[#allocation5 + $0xf8] sm:$0xff]  ;;  %570 = vmatpush.bf16.msra.mxu2 %v1228_v2  ;;  %v1235_v7 = vld [vmem:[#allocation5 + $0xf0] sm:$0xff]  ;;  %v1226_v10 = vld [vmem:[#allocation5 + $0xa8] sm:$0xff] }
  0x20   :  { %584 = vmatpush.bf16.msra.mxu3 %v1236_v3  ;;  %v1234_v11 = vld [vmem:[#allocation5 + $0xe8] sm:$0xff]  ;;  %v1209_v12 = vld [vmem:[#allocation5 + $0x20] sm:$0xff]  ;;  %v1208_v16 = vld [vmem:[#allocation5 + $0x18] sm:$0xff] }
  0x21   :  { %543 = vmatpush.bf16.msra.mxu0 %v1211_v4  ;;  %v1217_v13 = vld [vmem:[#allocation5 + $0x60] sm:$0xff]  ;;  %v1216_v17 = vld [vmem:[#allocation5 + $0x58] sm:$0xff]  ;;  %v1207_v20 = vld [vmem:[#allocation5 + $0x10] sm:$0xff] }
  0x22   :  { %557 = vmatpush.bf16.msra.mxu1 %v1219_v5  ;;  %v1225_v14 = vld [vmem:[#allocation5 + $0xa0] sm:$0xff]  ;;  %v1224_v18 = vld [vmem:[#allocation5 + $0x98] sm:$0xff]  ;;  %v1215_v21 = vld [vmem:[#allocation5 + $0x50] sm:$0xff] }
  0x23   :  { %571 = vmatpush.bf16.msra.mxu2 %v1227_v6  ;;  %v1233_v15 = vld [vmem:[#allocation5 + $0xe0] sm:$0xff]  ;;  %v1232_v19 = vld [vmem:[#allocation5 + $0xd8] sm:$0xff]  ;;  %v1223_v22 = vld [vmem:[#allocation5 + $0x90] sm:$0xff] }
  0x24   :  { %585 = vmatpush.bf16.msra.mxu3 %v1235_v7  ;;  %v1231_v23 = vld [vmem:[#allocation5 + $0xd0] sm:$0xff]  ;;  %v1206_v24 = vld [vmem:[#allocation5 + $0x8] sm:$0xff]  ;;  %v1205_v28 = vld [vmem:[#allocation5] sm:$0xff] }
  0x25   :  { %544 = vmatpush.bf16.msra.mxu0 %v1210_v8  ;;  %v1214_v25 = vld [vmem:[#allocation5 + $0x48] sm:$0xff]  ;;  %v1213_v29 = vld [vmem:[#allocation5 + $0x40] sm:$0xff]  ;;  %v124_v30 = vld [vmem:[#allocation2] sm:$0xff] }
  0x26   :  { %558 = vmatpush.bf16.msra.mxu1 %v1218_v9  ;;  %v1222_v26 = vld [vmem:[#allocation5 + $0x88] sm:$0xff]  ;;  %v125_v32 = vld [vmem:[#allocation2 + $0x8] sm:$0xff]  ;;  %v132_v33 = vld [vmem:[#allocation2 + $0x40] sm:$0xff] }
  0x27   :  { %572 = vmatpush.bf16.msra.mxu2 %v1226_v10  ;;  %v1230_v27 = vld [vmem:[#allocation5 + $0xc8] sm:$0xff]  ;;  %v1244_v34 = vld [vmem:[#allocation5 + $0x138] sm:$0xff]  ;;  %v1221_v36 = vld [vmem:[#allocation5 + $0x80] sm:$0xff]  ;;  %v139_v43 = vpack.c.bf16 %v132_v33, %v125_v32 }
  0x28   :  { %586 = vmatpush.bf16.msra.mxu3 %v1234_v11  ;;  %v131_v31 = vld [vmem:[#allocation2 + $0x38] sm:$0xff]  ;;  %v1252_v35 = vld [vmem:[#allocation5 + $0x178] sm:$0xff]  ;;  %v1229_v37 = vld [vmem:[#allocation5 + $0xc0] sm:$0xff] }
  0x29   :  { %545 = vmatpush.bf16.msra.mxu0 %v1209_v12  ;;  %v126_v38 = vld [vmem:[#allocation2 + $0x10] sm:$0xff]  ;;  %v133_v39 = vld [vmem:[#allocation2 + $0x48] sm:$0xff]  ;;  %v138_v40 = vpack.c.bf16 %v131_v31, %v124_v30  ;;  %v127_v41 = vld [vmem:[#allocation2 + $0x18] sm:$0xff] }
  0x2a   :  { %559 = vmatpush.bf16.msra.mxu1 %v1217_v13  ;;  %v134_v42 = vld [vmem:[#allocation2 + $0x50] sm:$0xff]  ;;  %v1243_v45 = vld [vmem:[#allocation5 + $0x130] sm:$0xff]  ;;  %v140_v47 = vpack.c.bf16 %v133_v39, %v126_v38  ;;  %v1242_v49 = vld [vmem:[#allocation5 + $0x128] sm:$0xff] }
  0x2b   :  { %573 = vmatpush.bf16.msra.mxu2 %v1225_v14  ;;  %v1253_v44 = vld [vmem:[#allocation5 + $0x180] sm:$0xff]  ;;  %v1251_v46 = vld [vmem:[#allocation5 + $0x170] sm:$0xff]  ;;  %v141_v48 = vpack.c.bf16 %v134_v42, %v127_v41  ;;  %v1250_v50 = vld [vmem:[#allocation5 + $0x168] sm:$0xff] }
  0x2c   :  { %587 = vmatpush.bf16.msra.mxu3 %v1233_v15  ;;  %v1241_v51 = vld [vmem:[#allocation5 + $0x120] sm:$0xff]  ;;  %v1240_v53 = vld [vmem:[#allocation5 + $0x118] sm:$0xff]  ;;  %v1239_v57 = vld [vmem:[#allocation5 + $0x110] sm:$0xff] }
  0x2d   :  { %546 = vmatpush.bf16.msra.mxu0 %v1208_v16  ;;  %v1249_v52 = vld [vmem:[#allocation5 + $0x160] sm:$0xff]  ;;  %v1248_v54 = vld [vmem:[#allocation5 + $0x158] sm:$0xff]  ;;  %v1247_v58 = vld [vmem:[#allocation5 + $0x150] sm:$0xff] }
  0x2e   :  { %560 = vmatpush.bf16.msra.mxu1 %v1216_v17  ;;  %v130_v55 = vld [vmem:[#allocation2 + $0x30] sm:$0xff]  ;;  %v137_v56 = vld [vmem:[#allocation2 + $0x68] sm:$0xff]  ;;  %v1238_v60 = vld [vmem:[#allocation5 + $0x108] sm:$0xff] }
  0x2f   :  { %574 = vmatpush.bf16.msra.mxu2 %v1224_v18  ;;  %v144_v59 = vpack.c.bf16 %v137_v56, %v130_v55  ;;  %v1246_v61 = vld [vmem:[#allocation5 + $0x148] sm:$0xff]  ;;  %v1237_v62 = vld [vmem:[#allocation5 + $0x100] sm:$0xff]  ;;  %v128_v0 = vld [vmem:[#allocation2 + $0x20] sm:$0xff] }
  0x30   :  { %588 = vmatpush.bf16.msra.mxu3 %v1232_v19  ;;  %v1245_v63 = vld [vmem:[#allocation5 + $0x140] sm:$0xff]  ;;  %v135_v1 = vld [vmem:[#allocation2 + $0x58] sm:$0xff]  ;;  %v129_v2 = vld [vmem:[#allocation2 + $0x28] sm:$0xff] }
  0x31   :  { %547 = vmatpush.bf16.msra.mxu0 %v1207_v20  ;;  %v136_v3 = vld [vmem:[#allocation2 + $0x60] sm:$0xff]  ;;  %v142_v4 = vpack.c.bf16 %v135_v1, %v128_v0  ;;  %v1261_v6 = vld [vmem:[#allocation7 + $0x38] sm:$0xff]  ;;  %v1260_v7 = vld [vmem:[#allocation7 + $0x30] sm:$0xff] }
  0x32   :  { %561 = vmatpush.bf16.msra.mxu1 %v1215_v21  ;;  %v143_v5 = vpack.c.bf16 %v136_v3, %v129_v2  ;;  %v1259_v8 = vld [vmem:[#allocation7 + $0x28] sm:$0xff]  ;;  %v1258_v9 = vld [vmem:[#allocation7 + $0x20] sm:$0xff]  ;;  %v1257_v10 = vld [vmem:[#allocation7 + $0x18] sm:$0xff] }
  0x33   :  { %575 = vmatpush.bf16.msra.mxu2 %v1223_v22  ;;  %v1256_v11 = vld [vmem:[#allocation7 + $0x10] sm:$0xff]  ;;  %v1255_v12 = vld [vmem:[#allocation7 + $0x8] sm:$0xff]  ;;  %v1254_v16 = vld [vmem:[#allocation7] sm:$0xff] }
  0x34   :  { %589 = vmatpush.bf16.msra.mxu3 %v1231_v23  ;;  %v1294_v17 = vld [vmem:[#allocation11] ss:$0 sm:$0xff]  ;;  %v1269_v18 = vld [vmem:[#allocation8 + $0x38] sm:$0xff]  ;;  %v1268_v20 = vld [vmem:[#allocation8 + $0x30] sm:$0xff] }
  0x35   :  { %548 = vmatpush.bf16.msra.mxu0 %v1206_v24  ;;  %v1276_v55 = vld [vmem:[#allocation10 + $0x30] sm:$0xff]  ;;  %v1275_v56 = vld [vmem:[#allocation10 + $0x28] sm:$0xff]  ;;  %v1273_v2 = vld [vmem:[#allocation10 + $0x18] sm:$0xff] }
  0x36   :  { %562 = vmatpush.bf16.msra.mxu1 %v1214_v25  ;;  %v1267_v25 = vld [vmem:[#allocation8 + $0x28] sm:$0xff]  ;;  %v1272_v3 = vld [vmem:[#allocation10 + $0x10] sm:$0xff] }
  0x37   :  { %576 = vmatpush.bf16.msra.mxu2 %v1222_v26 }
  0x38   :  { %590 = vmatpush.bf16.msra.mxu3 %v1230_v27 }
  0x39   :  { %549 = vmatpush.bf16.msra.mxu0 %v1205_v28 }
  0x3a   :  { %563 = vmatpush.bf16.msra.mxu1 %v1213_v29  ;;  %v1266_v29 = vld [vmem:[#allocation8 + $0x20] sm:$0xff] }
  0x3b   :  { %577 = vmatpush.bf16.msra.mxu2 %v1221_v36 }
  0x3c   :  { %591 = vmatpush.bf16.msra.mxu3 %v1229_v37  ;;  %550 = vmatmul.bf16.vlgmr.msra.gmra.mxu0 %v138_v40 }
  0x3d   :  { %598 = vmatpush.bf16.msrb.mxu0 %v1244_v34  ;;  %564 = vmatmul.bf16.vlgmr.msra.gmra.mxu1 %v139_v43 }
  0x3e   :  { %612 = vmatpush.bf16.msrb.mxu1 %v1252_v35  ;;  %578 = vmatmul.bf16.vlgmr.msra.gmra.mxu2 %v140_v47 }
  0x3f   :  { %633 = vmatpush.bf16.msrb.mxu2 %v1253_v44  ;;  %592 = vmatmul.bf16.vlgmr.msra.gmra.mxu3 %v141_v48 }
  0x40   :  { %708 = vmatpush.bf16.msrb.mxu3 %v1261_v6 }
  0x41   :  { %599 = vmatpush.bf16.msrb.mxu0 %v1243_v45 }
  0x42   :  { %613 = vmatpush.bf16.msrb.mxu1 %v1251_v46 }
  0x43   :  { %790 = vmatpush.bf16.msra.mxu2 %v1269_v18 }
  0x44   :  { %709 = vmatpush.bf16.msrb.mxu3 %v1260_v7  ;;  %v1296_v7 = vld [vmem:[#allocation11 + $0x2] ss:$0 sm:$0xff] }
  0x45   :  { %600 = vmatpush.bf16.msrb.mxu0 %v1242_v49 }
  0x46   :  { %614 = vmatpush.bf16.msrb.mxu1 %v1250_v50  ;;  %v1265_v50 = vld [vmem:[#allocation8 + $0x18] sm:$0xff] }
  0x47   :  { %791 = vmatpush.bf16.msra.mxu2 %v1268_v20 }
  0x48   :  { %710 = vmatpush.bf16.msrb.mxu3 %v1259_v8 }
  0x49   :  { %601 = vmatpush.bf16.msrb.mxu0 %v1241_v51  ;;  %v1264_v51 = vld [vmem:[#allocation8 + $0x10] sm:$0xff] }
  0x4a   :  { %615 = vmatpush.bf16.msrb.mxu1 %v1249_v52  ;;  %v1263_v52 = vld [vmem:[#allocation8 + $0x8] sm:$0xff] }
  0x4b   :  { %792 = vmatpush.bf16.msra.mxu2 %v1267_v25 }
  0x4c   :  { %711 = vmatpush.bf16.msrb.mxu3 %v1258_v9 }
  0x4d   :  { %602 = vmatpush.bf16.msrb.mxu0 %v1240_v53  ;;  %v1262_v53 = vld [vmem:[#allocation8] sm:$0xff] }
  0x4e   :  { %616 = vmatpush.bf16.msrb.mxu1 %v1248_v54  ;;  %1108 = vmatmul.msk.bf16.vlgmr.msrb.gmra.mxu2 %vm538_vm0, %v144_v59  ;;  %v1277_v54 = vld [vmem:[#allocation10 + $0x38] sm:$0xff]  ;;  %v1295_v59 = vld [vmem:[#allocation11 + $0x1] ss:$0 sm:$0xff] }
  0x4f   :  { %793 = vmatpush.bf16.msra.mxu2 %v1266_v29 }
  0x50   :  { %712 = vmatpush.bf16.msrb.mxu3 %v1257_v10 }
  0x51   :  { %603 = vmatpush.bf16.msrb.mxu0 %v1239_v57  ;;  %v1274_v57 = vld [vmem:[#allocation10 + $0x20] sm:$0xff] }
  0x52   :  { %617 = vmatpush.bf16.msrb.mxu1 %v1247_v58 }
  0x53   :  { %794 = vmatpush.bf16.msra.mxu2 %v1265_v50 }
  0x54   :  { %713 = vmatpush.bf16.msrb.mxu3 %v1256_v11 }
  0x55   :  { %604 = vmatpush.bf16.msrb.mxu0 %v1238_v60 }
  0x56   :  { %618 = vmatpush.bf16.msrb.mxu1 %v1246_v61 }
  0x57   :  { %795 = vmatpush.bf16.msra.mxu2 %v1264_v51 }
  0x58   :  { %714 = vmatpush.bf16.msrb.mxu3 %v1255_v12 }
  0x59   :  { %605 = vmatpush.bf16.msrb.mxu0 %v1237_v62 }
  0x5a   :  { %619 = vmatpush.bf16.msrb.mxu1 %v1245_v63 }
  0x5b   :  { %796 = vmatpush.bf16.msra.mxu2 %v1263_v52 }
  0x5c   :  { %606 = vmatmul.bf16.vlgmr.msrb.gmra.mxu0 %v142_v4  ;;  %715 = vmatpush.bf16.msrb.mxu3 %v1254_v16  ;;  %v1271_v4 = vld [vmem:[#allocation10 + $0x8] sm:$0xff] }
  0x5d   :  { %620 = vmatmul.bf16.vlgmr.msrb.gmra.mxu1 %v143_v5  ;;  %872 = vmatpush.bf16.msra.mxu0 %v1277_v54  ;;  %v1270_v5 = vld [vmem:[#allocation10] sm:$0xff] }
  0x5f   :  { %797 = vmatpush.bf16.msra.mxu2 %v1262_v53 }
  0x61   :  { %873 = vmatpush.bf16.msra.mxu0 %v1276_v55 }
  0x65   :  { %874 = vmatpush.bf16.msra.mxu0 %v1275_v56 }
  0x69   :  { %875 = vmatpush.bf16.msra.mxu0 %v1274_v57 }
  0x6d   :  { %876 = vmatpush.bf16.msra.mxu0 %v1273_v2 }
  0x71   :  { %877 = vmatpush.bf16.msra.mxu0 %v1272_v3 }
  0x75   :  { %878 = vmatpush.bf16.msra.mxu0 %v1271_v4 }
  0x79   :  { %879 = vmatpush.bf16.msra.mxu0 %v1270_v5 }
  0xb9   :  { %v551_v13 = vpop.f32.mrf.mxu0 }
  0xba   :  { %v565_v14 = vpop.f32.mrf.mxu1  ;;  %v552_v19 = vadd.f32 %v1294_v17, %v551_v13 }
  0xbc   :  { %v566_v24 = vadd.f32 %v565_v14, %v552_v19 }
  0xc1   :  { %v579_v15 = vpop.f32.mrf.mxu2  ;;  %v553_v21 = vpop.f32.mrf.mxu0 }
  0xc2   :  { %v567_v22 = vpop.f32.mrf.mxu1  ;;  %v593_v26 = vpop.f32.mrf.mxu3  ;;  %v554_v27 = vadd.f32 %v1294_v17, %v553_v21  ;;  %v580_v28 = vadd.f32 %v579_v15, %v566_v24  ;;  %v1297_v15 = vld [vmem:[#allocation11 + $0x3] ss:$0 sm:$0xff] }
  0xc4   :  { %v568_v30 = vadd.f32 %v567_v22, %v554_v27  ;;  %v594_v33 = vadd.f32 %v593_v26, %v580_v28 }
  0xc9   :  { %v581_v23 = vpop.f32.mrf.mxu2 }
  0xca   :  { %v582_v35 = vadd.f32 %v581_v23, %v568_v30  ;;  %v595_v37 = vpop.f32.mrf.mxu3 }
  0xcc   :  { %v596_v38 = vadd.f32 %v595_v37, %v582_v35 }
  0xd1   :  { %v635_v34 = vpop.f32.mrf.mxu2 }
  0xd9   :  { %v607_v31 = vpop.f32.mrf.mxu0  ;;  %v637_v45 = vpop.f32.mrf.mxu2 }
  0xda   :  { %v621_v32 = vpop.f32.mrf.mxu1  ;;  %v608_v36 = vadd.f32 %v607_v31, %v594_v33 }
  0xdc   :  { %v622_v39 = vadd.f32 %v621_v32, %v608_v36 }
  0xde   :  { %v636_v43 = vadd.f32 %v635_v34, %v622_v39 }
  0xe0   :  { %v640_v47 = vmax.f32 %v636_v43, 0.0 }
  0xe1   :  { %v609_v40 = vpop.f32.mrf.mxu0 }
  0xe2   :  { %v610_v41 = vadd.f32 %v609_v40, %v596_v38  ;;  %v623_v42 = vpop.f32.mrf.mxu1 }
  0xe4   :  { %v624_v44 = vadd.f32 %v623_v42, %v610_v41 }
  0xe6   :  { %v638_v46 = vadd.f32 %v637_v45, %v624_v44 }
  0xe8   :  { %v641_v48 = vmax.f32 %v638_v46, 0.0 }
  0xea   :  { %v642_v49 = vpack.c.bf16 %v641_v48, %v640_v47 }
  0xec   :  { %716 = vmatmul.bf16.vlgmr.msrb.gmra.mxu3 %v642_v49 }
 0x16f   :  { %v717_v58 = vpop.f32.mrf.mxu3 }
 0x170   :  { %v718_v60 = vadd.f32 %v1295_v59, %v717_v58 }
 0x172   :  { %v722_v63 = vmax.f32 %v718_v60, 0.0 }
 0x177   :  { %v719_v61 = vpop.f32.mrf.mxu3 }
 0x178   :  { %v720_v62 = vadd.f32 %v1295_v59, %v719_v61 }
 0x17a   :  { %v723_v0 = vmax.f32 %v720_v62, 0.0 }
 0x17c   :  { %v724_v1 = vpack.c.bf16 %v723_v0, %v722_v63 }
 0x17e   :  { %798 = vmatmul.bf16.vlgmr.msra.gmra.mxu2 %v724_v1 }
 0x201   :  { %v799_v6 = vpop.f32.mrf.mxu2 }
 0x202   :  { %v800_v8 = vadd.f32 %v1296_v7, %v799_v6 }
 0x204   :  { %v804_v11 = vmax.f32 %v800_v8, 0.0 }
 0x209   :  { %v801_v9 = vpop.f32.mrf.mxu2 }
 0x20a   :  { %v802_v10 = vadd.f32 %v1296_v7, %v801_v9 }
 0x20c   :  { %v805_v12 = vmax.f32 %v802_v10, 0.0 }
 0x20e   :  { %v806_v13 = vpack.c.bf16 %v805_v12, %v804_v11 }
 0x210   :  { %880 = vmatmul.bf16.vlgmr.msra.gmra.mxu0 %v806_v13 }
 0x28d   :  { %v881_v14 = vpop.f32.mrf.mxu0 }
 0x28e   :  { %v882_v17 = vadd.f32 %v1297_v15, %v881_v14 }
 0x295   :  { %v883_v16 = vpop.f32.mrf.mxu0 }
 0x296   :  { %v884_v18 = vadd.f32 %v1297_v15, %v883_v16 }
 0x298   :  { %v1281_v19 = vpack.c.bf16 %v884_v18, %v882_v17 }
 0x29a   :  { %1282 = vst [vmem:[#allocation13] sm:$0xff] %v1281_v19  }
 0x29b   :  { %902 = dma.vmem_to_hbm [thread:$0]  %s895_s26, 128, %s897_s7, [#allocation4], %s1477_s29, %s1477_s29, %s1478_s30  }
 0x29c   :  { %1474 = dma.done.wait [#allocation4], 128  }
 0x29d   :  { %1475 = vsyncadd [#allocation4], 4294967168 }
 0x29e   :  { %907 = vsyncpa [#allocation3], 1 }
 0x29f   :  { %908 = vsyncpa [#allocation6], 1 }
 0x2a0   :  { %909 = vsyncpa [#allocation9], 1 }
 0x2a1   :  { %910 = vsyncpa [#allocation12], 1 }
 0x2a2   :  { %911 = vsyncpa [#allocation4], 1 }

</bundles_post_ra>
